<compile_context>
chip_gen: v7x
topology: tpu7x:2x2x1
jax: 0.10.0
libtpu: 0.0.40
codegen_flags: <defaults>
</compile_context>

<pallas_src>
import jax
import jax.numpy as jnp
from jax.experimental import pallas as pl
from jax.experimental.pallas import tpu as pltpu


def _layer_attn_pool_kernel(x_ref, q_ref, wh_ref, out_ref):
    # x_ref  : (TB, L, H)  batch tile in hs layout (H on lanes, L on sublanes)
    # q_ref  : (1, H)      attention query (resident across grid steps)
    # wh_ref : (H, H)      output projection (resident across grid steps)
    # out_ref: (TB, H)
    x = x_ref[...]                                      # (TB, L, H) f32
    q = q_ref[...]                                      # (1, H)

    # scores[b, l] = sum_h x[b, l, h] * q[h]   (VPU multiply + lane-axis reduce)
    s = jnp.sum(x * q[None, :, :], axis=-1)             # (TB, L)

    # softmax over L
    m = jnp.max(s, axis=-1, keepdims=True)              # (TB, 1)
    e = jnp.exp(s - m)                                   # (TB, L)
    denom = jnp.sum(e, axis=-1, keepdims=True)           # (TB, 1)
    attn = e * pl.reciprocal(denom, approx=True)          # EUP rcp: idle slot

    # pooled[b, h] = sum_l attn[b, l] * x[b, l, h]  (VPU multiply + sublane reduce)
    pooled = jnp.sum(x * attn[:, :, None], axis=1)        # (TB, H)

    # final projection: w_h^T @ pooled^T == pooled @ w_h   (MXU)
    out = jnp.dot(pooled, wh_ref[...], preferred_element_type=jnp.float32)
    out_ref[...] = out.astype(out_ref.dtype)


def _round_up(v, m):
    return ((v + m - 1) // m) * m


def _vmem_limit_bytes():
    """Per-generation VMEM limit with headroom (v5e/v6e: 128 MiB, v7x: 64 MiB)."""
    try:
        cap = int(pltpu.get_tpu_info().vmem_capacity_bytes)
    except Exception:
        cap = 64 << 20  # conservative default = v7x per-TC VMEM
    # 96 MiB on 128 MiB chips (v5e/v6e), 48 MiB on v7x.
    return min(int(cap * 3 // 4), 100 << 20)


def _choose_batch_tile(B, L, H, vmem_limit_bytes):
    """Batch rows per grid step, from an accurate VMEM footprint.

    Charges the double-buffered residents (q, w_h), the double-buffered out
    tile and ~two x-tile-sized broadcast-multiply temporaries on top of the
    double-buffered x tile itself, then takes the largest tile that fits.
    """
    elt = 4                                    # float32
    l_pad = _round_up(max(L, 1), 8)            # sublane padding of the x tile
    h_pad = _round_up(max(H, 1), 128)          # lane padding

    resident = 2 * _round_up(H, 8) * h_pad * elt      # w_h, double-buffered
    resident += 2 * 8 * h_pad * elt                   # q,   double-buffered
    slack = 2 << 20                                   # Mosaic internal scratch / code

    budget = vmem_limit_bytes - resident - slack
    # per batch row: x tile x2 buffers + ~2 broadcast-multiply temps + out x2 + pooled
    per_row = (2 + 2) * l_pad * h_pad * elt + 3 * h_pad * elt
    if budget < per_row:
        budget = per_row                               # degenerate: fall back to tb=1

    tb = int(budget // per_row)
    tb = max(1, min(tb, B, 1024))
    if tb >= B:
        return B
    # Output block is (tb, H): when tb is not the full batch, the sublane dim
    # must be a multiple of 8.  Keep at least 8 rows.
    tb = max(8, (tb // 8) * 8)
    return min(tb, B)


def layer_attention_pooling(hidden_states, q, w_h):
    """hidden_states: (B, H, L) float32 (channels-first, as the PyTorch module
    receives it); q: (1, H); w_h: (H, H).  Returns (B, H) float32."""
    B, H, L = hidden_states.shape
    assert q.shape == (1, H) and w_h.shape == (H, H)

    # hs layout puts H on the 128-lane axis (dense vregs / VMEM / DMA when
    # L << 128).  Mirrors the module's permute(0, 2, 1).
    hs = jnp.transpose(hidden_states, (0, 2, 1)).astype(jnp.float32)   # (B, L, H)

    vmem_limit = _vmem_limit_bytes()
    tb = _choose_batch_tile(B, L, H, vmem_limit)
    num_tiles = pl.cdiv(B, tb)

    # Shard batch tiles across TensorCores when there is more than one tile
    # (matters on v7x: 2 TCs, HBM bandwidth is per-TC); plain "parallel" does
    # not reliably split work across cores.
    dim_sem = (pltpu.CORE_PARALLEL if num_tiles >= 2 else pltpu.PARALLEL,)

    return pl.pallas_call(
        _layer_attn_pool_kernel,
        out_shape=jax.ShapeDtypeStruct((B, H), jnp.float32),
        grid_spec=pltpu.PrefetchScalarGridSpec(
            num_scalar_prefetch=0,
            grid=(num_tiles,),
            in_specs=[
                # x: streamed from HBM exactly once.  A partial final block
                # (B % tb != 0) is safe: rows are fully independent and
                # out-of-range output rows are masked on writeback.
                pl.BlockSpec((tb, L, H), lambda b: (b, 0, 0)),
                pl.BlockSpec((1, H), lambda b: (0, 0)),    # q  : resident
                pl.BlockSpec((H, H), lambda b: (0, 0)),    # w_h: resident
            ],
            out_specs=pl.BlockSpec((tb, H), lambda b: (b, 0)),
        ),
        compiler_params=pltpu.CompilerParams(
            dimension_semantics=dim_sem,
            vmem_limit_bytes=vmem_limit,
        ),
    )(hs, q, w_h)


def _reference(hidden_states, q, w_h):
    # pure-JAX reference mirroring the PyTorch code
    hs = jnp.transpose(hidden_states, (0, 2, 1))       # (B, L, H)
    s = jnp.einsum("oh,blh->bl", q, hs)                # (B, L)
    attn = jax.nn.softmax(s, axis=-1)                  # (B, L)
    pooled = jnp.einsum("bl,blh->bh", attn, hs)        # (B, H)
    return pooled @ w_h                                # (B, H)


if __name__ == "__main__":
    B, H, L = 2, 32, 8        # batch, hidden_size, pooled axis (#layers / seq)

    key = jax.random.PRNGKey(0)
    kx, kq, kw = jax.random.split(key, 3)

    # deterministic parameter init (normal, scale=0.1, matching __init__ shapes)
    q = 0.1 * jax.random.normal(kq, (1, H), dtype=jnp.float32)
    w_h = 0.1 * jax.random.normal(kw, (H, H), dtype=jnp.float32)

    # input: (B, hidden_size, L) channels-first, like the PyTorch forward
    x = jax.random.normal(kx, (B, H, L), dtype=jnp.float32)

    out = jax.block_until_ready(layer_attention_pooling(x, q, w_h))
    ref = _reference(x, q, w_h)

    assert out.shape == (B, H)
    # Tolerance covers the EUP approximate reciprocal in the softmax
    # normalization plus any f32-via-bf16 MXU pass difference between the
    # Pallas projection matmul and the XLA reference matmul.
    assert jnp.allclose(out, ref, atol=2e-3, rtol=2e-3), "mismatch vs reference"

    print("KERNEL_OK")
</pallas_src>

<mosaic_0001>
module attributes {stable_mosaic.version = 11 : i64} {
  func.func @_layer_attn_pool_kernel(%arg0: i32, %arg1: memref<2x8x32xf32, #tpu.memory_space<vmem>>, %arg2: memref<1x32xf32, #tpu.memory_space<vmem>>, %arg3: memref<32x32xf32, #tpu.memory_space<vmem>>, %arg4: memref<2x32xf32, #tpu.memory_space<vmem>>) attributes {dimension_semantics = [#tpu.dimension_semantics<parallel>], iteration_bounds = array<i64: 1>, scalar_prefetch = 0 : i64, scratch_operands = 0 : i64, tpu.core_type = #tpu.core_type<tc>, window_params = [{transform_indices = @transform_0, window_bounds = array<i64: 2, 8, 32>}, {pipeline_mode = #tpu.pipeline_mode<synchronous>, transform_indices = @transform_1, window_bounds = array<i64: 1, 32>}, {pipeline_mode = #tpu.pipeline_mode<synchronous>, transform_indices = @transform_2, window_bounds = array<i64: 32, 32>}, {transform_indices = @transform_3, window_bounds = array<i64: 2, 32>}]} {
    %c0 = arith.constant 0 : index
    %c0_0 = arith.constant 0 : index
    %c0_1 = arith.constant 0 : index
    %0 = vector.load %arg1[%c0, %c0_0, %c0_1] : memref<2x8x32xf32, #tpu.memory_space<vmem>>, vector<2x8x32xf32>
    %c0_2 = arith.constant 0 : index
    %c0_3 = arith.constant 0 : index
    %1 = vector.load %arg2[%c0_2, %c0_3] : memref<1x32xf32, #tpu.memory_space<vmem>>, vector<1x32xf32>
    %2 = vector.shape_cast %1 : vector<1x32xf32> to vector<1x1x32xf32>
    %3 = vector.broadcast %2 : vector<1x1x32xf32> to vector<2x8x32xf32>
    %4 = arith.mulf %0, %3 : vector<2x8x32xf32>
    %cst = arith.constant dense<0.000000e+00> : vector<2x8xf32>
    %5 = vector.multi_reduction <add>, %4, %cst [2] : vector<2x8x32xf32> to vector<2x8xf32>
    %cst_4 = arith.constant dense<0xFF800000> : vector<2xf32>
    %6 = vector.multi_reduction <maximumf>, %5, %cst_4 [1] : vector<2x8xf32> to vector<2xf32>
    %7 = vector.shape_cast %6 : vector<2xf32> to vector<2x1xf32>
    %8 = vector.broadcast %7 : vector<2x1xf32> to vector<2x8xf32>
    %9 = arith.subf %5, %8 : vector<2x8xf32>
    %10 = math.exp %9 : vector<2x8xf32>
    %cst_5 = arith.constant dense<0.000000e+00> : vector<2xf32>
    %11 = vector.multi_reduction <add>, %10, %cst_5 [1] : vector<2x8xf32> to vector<2xf32>
    %12 = vector.shape_cast %11 : vector<2xf32> to vector<2x1xf32>
    %13 = tpu.reciprocal %12 {approx = true} : vector<2x1xf32> -> vector<2x1xf32>
    %14 = vector.broadcast %13 : vector<2x1xf32> to vector<2x8xf32>
    %15 = arith.mulf %10, %14 : vector<2x8xf32>
    %16 = vector.shape_cast %15 : vector<2x8xf32> to vector<2x8x1xf32>
    %17 = vector.broadcast %16 : vector<2x8x1xf32> to vector<2x8x32xf32>
    %18 = arith.mulf %0, %17 : vector<2x8x32xf32>
    %cst_6 = arith.constant dense<0.000000e+00> : vector<2x32xf32>
    %19 = vector.multi_reduction <add>, %18, %cst_6 [1] : vector<2x8x32xf32> to vector<2x32xf32>
    %c0_7 = arith.constant 0 : index
    %c0_8 = arith.constant 0 : index
    %20 = vector.load %arg3[%c0_7, %c0_8] : memref<32x32xf32, #tpu.memory_space<vmem>>, vector<32x32xf32>
    %cst_9 = arith.constant dense<0.000000e+00> : vector<2x32xf32>
    %21 = tpu.matmul %19, %20, %cst_9 {dimension_numbers = #tpu.dot_dimension_numbers<[1], [0], [0], [1], [0, 0, 1, 1], [], []>} : vector<2x32xf32>, vector<32x32xf32>, vector<2x32xf32> -> vector<2x32xf32>
    %c0_10 = arith.constant 0 : index
    %c0_11 = arith.constant 0 : index
    %22 = vector.load %arg4[%c0_10, %c0_11] : memref<2x32xf32, #tpu.memory_space<vmem>>, vector<2x32xf32>
    tpu.vector_store %arg4[%c0_10, %c0_11], %21 {strides = array<i32>} : memref<2x32xf32, #tpu.memory_space<vmem>>, vector<2x32xf32>,
    return
  }
  func.func @transform_0(%arg0: i32) -> (i32, i32, i32) {
    %c0_i32 = arith.constant 0 : i32
    %c0_i32_0 = arith.constant 0 : i32
    %c0_i32_1 = arith.constant 0 : i32
    return %arg0, %c0_i32, %c0_i32_0 : i32, i32, i32
  }
  func.func @transform_1(%arg0: i32) -> (i32, i32) {
    %c0_i32 = arith.constant 0 : i32
    %c0_i32_0 = arith.constant 0 : i32
    %c0_i32_1 = arith.constant 0 : i32
    return %c0_i32, %c0_i32_0 : i32, i32
  }
  func.func @transform_2(%arg0: i32) -> (i32, i32) {
    %c0_i32 = arith.constant 0 : i32
    %c0_i32_0 = arith.constant 0 : i32
    %c0_i32_1 = arith.constant 0 : i32
    return %c0_i32, %c0_i32_0 : i32, i32
  }
  func.func @transform_3(%arg0: i32) -> (i32, i32) {
    %c0_i32 = arith.constant 0 : i32
    %c0_i32_0 = arith.constant 0 : i32
    return %arg0, %c0_i32 : i32, i32
  }
}

</mosaic_0001>

<bundles_post_ra>
// kernel: tpu_custom_call.1
= control target key start
LH: loop header
LB: loop body
LE: loop exit
PB: predicated region body
PF: predicated region fallthrough
CT: control target
= control target key end

     0   :  { %8 = vsyncpa [#allocation3], 0  ;;  %s454_s0 = inlined_call_operand.hbm [shape: f32[2,8,32], index: 0, kind: input, shape index: {}]   ;;  %s455_s1 = inlined_call_operand.vmem [shape: f32[1,32], index: 1, kind: input, shape index: {}]   ;;  %s456_s2 = inlined_call_operand.hbm [shape: f32[32,32], index: 2, kind: input, shape index: {}]   ;;  %s457_s3 = inlined_call_operand.hbm [shape: f32[2,32], index: 3, kind: output, shape index: {}]  }
   0x1   :  { %9 = vsyncpa [#allocation6], 0 }
   0x2   :  { %10 = vsyncpa [#allocation4], 0  ;;  %s368_s12 = smov [#allocation2]   ;;  %s296_s16 = scalar_lea.hbm %s454_s0, 256 }
   0x3   :  { %s16_s13 = sshll.u32 %s368_s12, 4  ;;  %p297_p0 = scmp.ne.s32.totalorder %s454_s0, %s296_s16  ;;  %s17_s13 = int_to_ptr.vmem [resolvable:$true] %s16_s13 }
   0x4   :  { %p300_p1 = scmp.lt.u32.totalorder %s296_s16, %s454_s0 }
   0x6   :  { %p302_p2 = pnand %p300_p1, %p297_p0 }
   0x8   :  { %305 = shalt.err (!%p302_p2)
}
   0x9   :  { %s306_s21 = scalar_lea.vmem %s17_s13, 256  ;;  %p311_p4 = scmp.lt.s32.totalorder %s17_s13, %s17_s13 }
   0xa   :  { %p307_p3 = scmp.ne.s32.totalorder %s17_s13, %s306_s21  ;;  %p312_p5 = scmp.lt.s32.totalorder %s306_s21, %s306_s21 }
   0xc   :  { %p313_p6 = por %p312_p5, %p311_p4 }
   0xe   :  { %p314_p7 = pnand %p313_p6, %p307_p3 }
  0x10   :  { %317 = shalt.err (!%p314_p7)
}
  0x11   :  { %s369_s22 = smov 128   ;;  %s370_s23 = smov 8  }
  0x12   :  { %22 = dma.hbm_to_vmem [thread:$0]  %s454_s0, 256, %s17_s13, [#allocation3], %s369_s22, %s369_s22, %s370_s23  }
  0x13   :  { %s371_s26 = smov [#allocation5]   ;;  %s318_s30 = scalar_lea.hbm %s456_s2, 512 }
  0x14   :  { %s30_s27 = sshll.u32 %s371_s26, 4  ;;  %p319_p8 = scmp.ne.s32.totalorder %s456_s2, %s318_s30  ;;  %s31_s27 = int_to_ptr.vmem [resolvable:$true] %s30_s27 }
  0x15   :  { %p322_p9 = scmp.lt.u32.totalorder %s318_s30, %s456_s2 }
  0x17   :  { %p324_p10 = pnand %p322_p9, %p319_p8 }
  0x19   :  { %327 = shalt.err (!%p324_p10)
}
  0x1a   :  { %s328_s8 = scalar_lea.vmem %s31_s27, 512  ;;  %p333_p12 = scmp.lt.s32.totalorder %s31_s27, %s31_s27 }
  0x1b   :  { %p329_p11 = scmp.ne.s32.totalorder %s31_s27, %s328_s8  ;;  %p334_p13 = scmp.lt.s32.totalorder %s328_s8, %s328_s8 }
  0x1d   :  { %p335_p0 = por %p334_p13, %p333_p12 }
  0x1f   :  { %p336_p1 = pnand %p335_p0, %p329_p11 }
  0x21   :  { %339 = shalt.err (!%p336_p1)
}
  0x22   :  { %36 = dma.hbm_to_vmem [thread:$0]  %s456_s2, 512, %s31_s27, [#allocation6], %s369_s22, %s369_s22, %s370_s23  }
  0x23   :  { %362 = dma.done.wait [#allocation3], 256  }
  0x24   :  { %363 = vsyncadd [#allocation3], 4294967040 }
  0x25   :  { %364 = dma.done.wait [#allocation6], 512  }
  0x26   :  { %365 = vsyncadd [#allocation6], 4294966784  ;;  %v421_v0 = vld [vmem:[#allocation2] sm:$0xff]  ;;  %vm54_vm0 = vcmask 261120   ;;  %v426_v2 = vld [vmem:[#allocation2 + $0x8] sm:$0xff]  ;;  %v63_v7 = vlaneseq  ;;  %vm73_vm1 = vcmask 1041409  }
  0x27   :  { %v255_v1 = vld [vmem:[%s455_s1] ss:$0 sm:$0xff]  ;;  %vm76_vm2 = vcmask 58368   ;;  %v372_v17 = vmov 0   ;;  %v158_v41 = vld [vmem:[#allocation5] sm:$0xff]  ;;  %v159_v42 = vld [vmem:[#allocation5 + $0x8] sm:$0xff] }
  0x28   :  { %v52_v3 = vmul.f32 %v255_v1, %v421_v0  ;;  %v53_v4 = vmul.f32 %v255_v1, %v426_v2  ;;  %v64_v8 = vand.u32 127, %v63_v7  ;;  %v66_v9 = vshrl.u32 %v63_v7, 7  ;;  %289 = vset.pattern.permute.xlu0 %v372_v17  ;;  %288 = vset.pattern.permute.xlu1 %v372_v17  ;;  %v160_v45 = vld [vmem:[#allocation5 + $0x10] sm:$0xff]  ;;  %v161_v46 = vld [vmem:[#allocation5 + $0x18] sm:$0xff]  ;;  %s376_s1 = smov [#allocation7]  }
  0x29   :  { %v274_v43 = vpack.c.bf16 %v159_v42, %v158_v41  ;;  %v373_v44 = vmov 0.0|0.0   ;;  %v277_v47 = vpack.c.bf16 %v161_v46, %v160_v45  ;;  %vm374_vm3 = vmmov 0   ;;  %s245_s2 = sshll.u32 %s376_s1, 4  ;;  %s246_s2 = int_to_ptr.vmem [resolvable:$true] %s245_s2 }
  0x2a   :  { %v55_v5 = vsel %vm54_vm0, %v52_v3, 0.0  ;;  %v58_v6 = vsel %vm54_vm0, %v53_v4, 0.0  ;;  %v67_v11 = vsub.s32 %v64_v8, %v66_v9  ;;  %v83_v18 = vsub.s32 0, %v66_v9  ;;  %273 = vmatprep.subr.bf16.mxu0 %v373_v44  ;;  %s340_s12 = scalar_lea.vmem %s246_s2, 32  ;;  %p345_p3 = scmp.lt.s32.totalorder %s246_s2, %s246_s2 }
  0x2b   :  { %56 = vadd.xlane.f32.xlu0 %v55_v5  ;;  %v87_v19 = vsub.s32 1, %v66_v9  ;;  %275 = vmatpush3.bf16.msra.mxu0 %v274_v43  ;;  %v375_v48 = vmov 0.0   ;;  %vm237_vm4 = vcmask 254976   ;;  %p341_p2 = scmp.ne.s32.totalorder %s246_s2, %s340_s12  ;;  %p346_p4 = scmp.lt.s32.totalorder %s340_s12, %s340_s12 }
  0x2c   :  { %276 = vmatprep.subr.bf16.mxu0 %v373_v44  ;;  %270 = vmatprep.mubr.msk.f32.mxu0 %vm374_vm3, %v375_v48 }
  0x2d   :  { %p347_p5 = por %p346_p4, %p345_p3 }
  0x2f   :  { %59 = vadd.xlane.f32.xlu0 %v58_v6  ;;  %278 = vmatpush3.bf16.msra.mxu0 %v277_v47  ;;  %p348_p6 = pnand %p347_p5, %p341_p2 }
  0xb8   :  { %v57_v10 = vpop.xlane.xlu0 %56 }
  0xb9   :  { %v68_v13 = vrot.slane %v57_v10, %v67_v11 }
  0xbc   :  { %v60_v12 = vpop.xlane.xlu0 %59 }
  0xbd   :  { %v72_v14 = vrot.slane %v60_v12, %v67_v11 }
  0xbf   :  { %v74_v15 = vsel %vm73_vm1, %v72_v14, %v68_v13 }
  0xc0   :  { %v77_v16 = vsel %vm76_vm2, %v74_v15, -inf }
  0xc1   :  { %78 = vmax.xlane.f32.xlu1 %v77_v16 }
 0x14e   :  { %v79_v20 = vpop.xlane.xlu1 %78 }
 0x14f   :  { %v84_v21 = vrot.slane %v79_v20, %v83_v18  ;;  %v88_v22 = vrot.slane %v79_v20, %v87_v19 }
 0x151   :  { %v91_v23 = vsub.f32 %v57_v10, %v84_v21  ;;  %v92_v24 = vsub.f32 %v60_v12, %v88_v22 }
 0x153   :  { %v93_v25 = vmul.f32 1.442695, %v91_v23  ;;  %v95_v26 = vmul.f32 1.442695, %v92_v24 }
 0x155   :  { %290 = vpow2.f32 %v93_v25 }
 0x156   :  { %292 = vpow2.f32 %v95_v26 }
 0x15f   :  { %v291_v27 = vpop.eup %290 }
 0x160   :  { %v293_v28 = vpop.eup %292  ;;  %100 = vperm.xlu1 %288, %v291_v27  }
 0x161   :  { %103 = vperm.xlu0 %289, %v293_v28  }
 0x1df   :  { %v101_v29 = vpop.permute.xlu1 %100 }
 0x1e0   :  { %v104_v30 = vpop.permute.xlu0 %103  ;;  %v108_v31 = vrot.slane %v101_v29, %v67_v11 }
 0x1e1   :  { %v112_v32 = vrot.slane %v104_v30, %v67_v11 }
 0x1e3   :  { %v113_v33 = vsel %vm73_vm1, %v112_v32, %v108_v31 }
 0x1e4   :  { %v115_v34 = vsel %vm76_vm2, %v113_v33, 0.0 }
 0x1e5   :  { %116 = vadd.xlane.f32.xlu1 %v115_v34 }
 0x272   :  { %v117_v35 = vpop.xlane.xlu1 %116 }
 0x273   :  { %294 = vrcp.f32 %v117_v35 }
 0x27d   :  { %v295_v36 = vpop.eup %294 }
 0x27e   :  { %v123_v37 = vrot.slane %v295_v36, %v83_v18  ;;  %v127_v39 = vrot.slane %v295_v36, %v87_v19 }
 0x280   :  { %v130_v38 = vmul.f32 %v291_v27, %v123_v37  ;;  %v131_v40 = vmul.f32 %v293_v28, %v127_v39 }
 0x282   :  { %134 = vperm.xlu0 %289, %v130_v38  }
 0x286   :  { %139 = vperm.xlu0 %289, %v131_v40  }
 0x301   :  { %v135_v49 = vpop.permute.xlu0 %134 }
 0x302   :  { %v142_v50 = vmul.f32 %v135_v49, %v421_v0 }
 0x304   :  { %v144_v51 = vsel %vm54_vm0, %v142_v50, 0.0 }
 0x305   :  { %v145_v52 = vrot.slane %v144_v51, 4  ;;  %v140_v53 = vpop.permute.xlu0 %139 }
 0x306   :  { %v143_v54 = vmul.f32 %v140_v53, %v426_v2 }
 0x307   :  { %v146_v55 = vadd.f32 %v145_v52, %v144_v51 }
 0x308   :  { %v151_v56 = vsel %vm54_vm0, %v143_v54, 0.0 }
 0x309   :  { %v147_v57 = vrot.slane %v146_v55, 2  ;;  %v152_v58 = vrot.slane %v151_v56, 4 }
 0x30b   :  { %v148_v59 = vadd.f32 %v147_v57, %v146_v55  ;;  %v153_v60 = vadd.f32 %v152_v58, %v151_v56 }
 0x30d   :  { %v154_v61 = vrot.slane %v153_v60, 2  ;;  %v149_v62 = vrot.slane %v148_v59, 1 }
 0x30f   :  { %v155_v63 = vadd.f32 %v154_v61, %v153_v60  ;;  %v150_v3 = vadd.f32 %v149_v62, %v148_v59 }
 0x311   :  { %v156_v1 = vrot.slane %v155_v63, 1 }
 0x313   :  { %v157_v4 = vadd.f32 %v156_v1, %v155_v63 }
 0x315   :  { %v164_v0 = vsel %vm73_vm1, %v157_v4, %v150_v3 }
 0x316   :  { %271 = vmatmul.mubr.msk.f32.vlgmr.msra.gmra.mrb[0].mxu0 %vm54_vm0, %v164_v0 }
 0x3e9   :  { %v233_v2 = vpop.f32.mrb[0].mxu0 }
 0x3ea   :  { %v272_v5 = vpop.f32.mrb[1].mxu0  ;;  %238 = vst.msk [vmem:[#allocation7] sm:$0x3] %vm237_vm4, %v233_v2 }
 0x3eb   :  { %351 = shalt.err (!%p348_p6)
}
 0x3ec   :  { %s352_s15 = scalar_lea.hbm %s457_s3, 32 }
 0x3ed   :  { %p353_p7 = scmp.ne.s32.totalorder %s457_s3, %s352_s15  ;;  %p356_p8 = scmp.lt.u32.totalorder %s352_s15, %s457_s3 }
 0x3ef   :  { %p358_p9 = pnand %p356_p8, %p353_p7 }
 0x3f1   :  { %361 = shalt.err (!%p358_p9)
}
 0x3f2   :  { %248 = dma.vmem_to_hbm [thread:$0]  %s246_s2, 32, %s457_s3, [#allocation4]  }
 0x3f3   :  { %366 = dma.done.wait [#allocation4], 32  }
 0x3f4   :  { %367 = vsyncadd [#allocation4], 4294967264 }
 0x3f5   :  { %252 = vsyncpa [#allocation3], 1 }
 0x3f6   :  { %253 = vsyncpa [#allocation6], 1 }
 0x3f7   :  { %254 = vsyncpa [#allocation4], 1 }

</bundles_post_ra>
